<compile_context>
chip_gen: v7x
topology: tpu7x:2x2x1
jax: 0.10.0
libtpu: 0.0.40
codegen_flags: <defaults>
</compile_context>

<pallas_src>
import numpy as np
import jax
import jax.numpy as jnp
from jax.experimental import pallas as pl
from jax.experimental.pallas import tpu as pltpu


def _round_up(x, m):
    return (x + m - 1) // m * m


# -----------------------------------------------------------------------------
# Weight pre-fusion (hoist out of the per-call path; cache the result).
#   W_fused^T (D, V) = proj_w^T (D, H) @ emb_table^T (H, V), cast to bf16.
# -----------------------------------------------------------------------------
def fuse_wordnn_weights(emb_table, proj_w, dtype=jnp.bfloat16):
    return jnp.dot(proj_w.T, emb_table.T,
                   preferred_element_type=jnp.float32).astype(dtype)


# -----------------------------------------------------------------------------
# Pallas kernel: transposed one-hot gather of the pre-fused (D, V) table.
#   out^T (D, TM) = W_fused^T (D, V) @ one_hot^T (V, TM)
# All matmul operands are bf16; accumulation is f32 on the MXU.
# -----------------------------------------------------------------------------
def _gather_project_kernel(ids_ref, wt_ref, out_ref):
    # ids_ref : (1, TM)  int32    token id per pixel (pixels on lanes)
    # wt_ref  : (D, V)   bfloat16 fused weight, transposed, VMEM-resident
    # out_ref : (D, TM)  float32  output tile, lane-dense (already NCHW-ordered)
    ids = ids_ref[...]                                            # (1, TM)
    v = wt_ref.shape[1]
    # (V, 1) sublane iota; the compare broadcasts against (1, TM) ids -> (V, TM).
    row_ids = jax.lax.broadcasted_iota(jnp.int32, (v, 1), 0)      # (V, 1)
    one_hot_t = (row_ids == ids).astype(wt_ref.dtype)             # (V, TM) bf16, exact 0/1
    # NOTE: out-of-range ids (< 0 or >= V) produce an all-zero column -> zero
    # output pixel (PyTorch nn.Embedding would raise instead).
    out_ref[...] = jnp.dot(wt_ref[...], one_hot_t,
                           preferred_element_type=jnp.float32).astype(out_ref.dtype)


def _gather_project_pallas(ids_b1n, w_fused_t, *, tm):
    # ids_b1n   : (B, 1, N_pad) int32, N_pad divisible by tm
    # w_fused_t : (D, V) bfloat16   fused weight, transposed
    b, _, n_pad = ids_b1n.shape
    d, v = w_fused_t.shape
    assert n_pad % tm == 0
    grid = (b, n_pad // tm)

    w_itemsize = jnp.dtype(w_fused_t.dtype).itemsize

    # Explicit per-step VMEM footprint (review item, matters on v7x's 64 MiB):
    #   2x ids tile (double-buffered) + weight + 2x out tile + (V,TM) one-hot temp.
    vmem_needed = (2 * tm * 4) + (2 * d * v * w_itemsize) \
                + (2 * d * tm * 4) + (v * tm * w_itemsize)
    vmem_limit = int(min(max(2 * vmem_needed + (8 << 20), 16 << 20), 48 << 20))

    cost = pl.CostEstimate(
        flops=int(2 * b * n_pad * v * d),
        transcendentals=0,
        bytes_accessed=int(ids_b1n.size * 4 + w_fused_t.size * w_itemsize
                           + b * d * n_pad * 4),
    )

    return pl.pallas_call(
        _gather_project_kernel,
        out_shape=jax.ShapeDtypeStruct((b, d, n_pad), jnp.float32),
        grid_spec=pltpu.PrefetchScalarGridSpec(
            num_scalar_prefetch=0,
            grid=grid,
            in_specs=[
                # ids: batch dim squeezed, (1, TM) tile, pixels on lanes.
                pl.BlockSpec((None, 1, tm), lambda bi, ti: (bi, 0, ti)),
                # fused transposed weight: full table, constant index map
                # (fetched once; single-buffer at production V).
                pl.BlockSpec((d, v), lambda bi, ti: (0, 0)),
            ],
            # output: batch dim squeezed, (D, TM) lane-dense tile.
            out_specs=pl.BlockSpec((None, d, tm), lambda bi, ti: (bi, 0, ti)),
        ),
        compiler_params=pltpu.CompilerParams(
            dimension_semantics=("parallel", "parallel"),
            vmem_limit_bytes=vmem_limit,
        ),
        cost_estimate=cost,
    )(ids_b1n, w_fused_t)


# -----------------------------------------------------------------------------
# Forward wrapper (mirrors WordnnEmbedding.forward)
# -----------------------------------------------------------------------------
def wordnn_embedding_forward(img, batched_inputs, emb_table, proj_w,
                             stride=1, use_UNK_text=False, tm=2048,
                             w_fused_t=None):
    """Returns [B, D, H//stride, W//stride] float32, matching the PyTorch module."""
    batch_b, _, batch_h, batch_w = img.shape
    hs, ws = batch_h // stride, batch_w // stride
    hw = hs * ws
    d = proj_w.shape[1]
    v = emb_table.shape[0]

    # --- chargrid rasterization: host-side glue over list[dict], same as PyTorch ---
    # (variable-size bbox fills with overwrite order; stays in NumPy on host)
    chargrid = np.zeros((batch_b, hs, ws), dtype=np.int32)
    for iter_b in range(batch_b):
        per_input_ids = np.asarray(batched_inputs[iter_b]['input_ids'])
        per_input_bbox = np.asarray(batched_inputs[iter_b]['bbox'], dtype=np.float64)
        short_length_w = min(len(per_input_ids), len(per_input_bbox))
        for word_idx in range(short_length_w):
            per_id = int(per_input_ids[word_idx])
            bbox = per_input_bbox[word_idx] / stride
            w_start, h_start, w_end, h_end = np.round(bbox).astype(int).tolist()
            if use_UNK_text:
                chargrid[iter_b, h_start:h_end, w_start:w_end] = 100
            else:
                chargrid[iter_b, h_start:h_end, w_start:w_end] = per_id

    # --- tile sizing ---
    #  (a) clamp to the padded pixel count (default request 2048);
    #  (b) prefer >= 2 pixel tiles per batch element -> even split across v7x's 2 TCs;
    #  (c) clamp so the per-step footprint (dominated by the bf16 (V,TM) one-hot)
    #      stays well under ~24 MiB of VMEM on every generation.
    tm_eff = max(128, min(tm, _round_up(hw, 128)))
    if hw > 128:
        tm_eff = min(tm_eff, max(128, _round_up((hw + 1) // 2, 128)))
    vmem_cap_tm = max(128, ((24 << 20) // (2 * v + 4 * d + 8)) // 128 * 128)
    tm_eff = min(tm_eff, vmem_cap_tm)
    hw_pad = _round_up(hw, tm_eff)

    ids_np = chargrid.reshape(batch_b, hw)
    if hw_pad != hw:
        # Padding pixels carry id 0 (compute embedding of token 0, sliced off below).
        ids_np = np.pad(ids_np, ((0, 0), (0, hw_pad - hw)))
    ids = jnp.asarray(ids_np.reshape(batch_b, 1, hw_pad), dtype=jnp.int32)

    # --- fused weight: prefer the cached/pre-fused table passed by the caller ---
    if w_fused_t is None:
        w_fused_t = fuse_wordnn_weights(emb_table, proj_w)          # (D, V) bf16

    # --- hot path in Pallas: bf16 one-hot gather of the fused table (one MXU matmul) ---
    out = _gather_project_pallas(ids, w_fused_t, tm=tm_eff)         # (B, D, hw_pad)

    # Output is already pixel-major per channel => NCHW after a reshape; no transpose.
    return out[:, :, :hw].reshape(batch_b, d, hs, ws)


# -----------------------------------------------------------------------------
# Main
# -----------------------------------------------------------------------------
if __name__ == "__main__":
    # Small, shape-consistent configuration.
    B, C, H, W = 2, 3, 16, 16
    VOCAB, HIDDEN, EMB_DIM = 256, 32, 16
    STRIDE = 1
    N_WORDS = 4

    key = jax.random.PRNGKey(0)
    k_img, k_emb, k_proj, k_ids, k_s, k_e = jax.random.split(key, 6)

    img = jax.random.normal(k_img, (B, C, H, W), dtype=jnp.float32)

    # Parameters (mirroring the module's init when use_pretrain_weight=False):
    #   nn.Embedding default init: N(0, 1)
    emb_table = jax.random.normal(k_emb, (VOCAB, HIDDEN), dtype=jnp.float32)
    #   nn.Linear(HIDDEN, EMB_DIM, bias=False) with xavier_uniform_
    bound = float(np.sqrt(6.0 / (HIDDEN + EMB_DIM)))
    proj_weight = jax.random.uniform(k_proj, (EMB_DIM, HIDDEN),
                                     minval=-bound, maxval=bound, dtype=jnp.float32)
    proj_w = proj_weight.T   # (HIDDEN, EMB_DIM), so x @ proj_w == Linear(x)

    # Hoisted weight fusion: computed once, reused across forwards (review item).
    w_fused_t = jax.block_until_ready(fuse_wordnn_weights(emb_table, proj_w))  # (D, V) bf16

    # Synthetic batched_inputs: list of dicts with 'input_ids' and 'bbox'
    # bbox format: [w_start, h_start, w_end, h_end] in image pixels.
    ids_np = np.asarray(jax.random.randint(k_ids, (B, N_WORDS), 1, VOCAB))
    starts = np.asarray(jax.random.randint(k_s, (B, N_WORDS, 2), 0, 8))     # (w_start, h_start)
    sizes = np.asarray(jax.random.randint(k_e, (B, N_WORDS, 2), 2, 8))
    ends = np.clip(starts + sizes, None, H)                                  # (w_end, h_end)
    batched_inputs = []
    for b in range(B):
        bbox = np.concatenate([starts[b], ends[b]], axis=-1).astype(np.float64)  # (N_WORDS, 4)
        batched_inputs.append({'input_ids': ids_np[b], 'bbox': bbox})

    out = wordnn_embedding_forward(img, batched_inputs, emb_table, proj_w,
                                   stride=STRIDE, use_UNK_text=False,
                                   w_fused_t=w_fused_t)
    out = jax.block_until_ready(out)
    out_np = np.asarray(out)
    assert out.shape == (B, EMB_DIM, H // STRIDE, W // STRIDE)

    # Rebuild the chargrid for the references (same overwrite order as the forward).
    chargrid_ref = np.zeros((B, H // STRIDE, W // STRIDE), dtype=np.int32)
    for b in range(B):
        for wi in range(N_WORDS):
            pid = int(ids_np[b, wi])
            w0, h0, w1, h1 = np.round(
                batched_inputs[b]['bbox'][wi] / STRIDE).astype(int).tolist()
            chargrid_ref[b, h0:h1, w0:w1] = pid

    # Check 1 (tight): kernel must exactly reproduce a row-gather of the bf16 fused
    # table (one-hot 0/1 is exact in bf16; accumulation is f32).
    wf = np.asarray(w_fused_t.astype(jnp.float32))                       # (D, V)
    ref_exact = wf[:, chargrid_ref.reshape(B, -1)]                       # (D, B, HW)
    ref_exact = np.transpose(ref_exact, (1, 0, 2)).reshape(B, EMB_DIM, H, W)
    np.testing.assert_allclose(out_np, ref_exact, rtol=1e-6, atol=1e-6)

    # Check 2 (module semantics): gather -> project -> NCHW in full f32.
    # Tolerance relaxed to cover the bf16 rounding of the fused weight
    # (relative error <= 2^-8 per element) adopted per the performance review.
    ref = jnp.take(emb_table, jnp.asarray(chargrid_ref), axis=0) @ proj_w    # (B,H,W,D)
    ref = jnp.transpose(ref, (0, 3, 1, 2))
    np.testing.assert_allclose(out_np, np.asarray(ref), rtol=2e-2, atol=2e-2)

    print("KERNEL_OK")
</pallas_src>

<mosaic_0001>
module attributes {stable_mosaic.version = 11 : i64} {
  func.func @_gather_project_kernel(%arg0: i32, %arg1: i32, %arg2: memref<1x1x128xi32, #tpu.memory_space<vmem>>, %arg3: memref<16x256xbf16, #tpu.memory_space<vmem>>, %arg4: memref<1x16x128xf32, #tpu.memory_space<vmem>>) attributes {dimension_semantics = [#tpu.dimension_semantics<parallel>, #tpu.dimension_semantics<parallel>], iteration_bounds = array<i64: 2, 2>, scalar_prefetch = 0 : i64, scratch_operands = 0 : i64, tpu.core_type = #tpu.core_type<tc>, window_params = [{transform_indices = @transform_0, window_bounds = array<i64: 1, 1, 128>}, {pipeline_mode = #tpu.pipeline_mode<synchronous>, transform_indices = @transform_1, window_bounds = array<i64: 16, 256>}, {transform_indices = @transform_2, window_bounds = array<i64: 1, 16, 128>}]} {
    %c0 = arith.constant 0 : index
    %c0_0 = arith.constant 0 : index
    %c0_1 = arith.constant 0 : index
    %0 = vector.load %arg2[%c0, %c0_0, %c0_1] : memref<1x1x128xi32, #tpu.memory_space<vmem>>, vector<1x1x128xi32>
    %1 = vector.shape_cast %0 : vector<1x1x128xi32> to vector<1x128xi32>
    %2 = tpu.iota {dimensions = array<i32: 0>} : vector<256x1xi32>
    %3 = vector.broadcast %2 : vector<256x1xi32> to vector<256x128xi32>
    %4 = vector.broadcast %1 : vector<1x128xi32> to vector<256x128xi32>
    %5 = arith.cmpi eq, %3, %4 : vector<256x128xi32>
    %6 = arith.extui %5 : vector<256x128xi1> to vector<256x128xi32>
    %7 = arith.sitofp %6 : vector<256x128xi32> to vector<256x128xf32>
    %8 = arith.truncf %7 : vector<256x128xf32> to vector<256x128xbf16>
    %c0_2 = arith.constant 0 : index
    %c0_3 = arith.constant 0 : index
    %9 = vector.load %arg3[%c0_2, %c0_3] : memref<16x256xbf16, #tpu.memory_space<vmem>>, vector<16x256xbf16>
    %cst = arith.constant dense<0.000000e+00> : vector<16x128xf32>
    %10 = tpu.matmul %9, %8, %cst {dimension_numbers = #tpu.dot_dimension_numbers<[1], [0], [0], [1], [0, 0, 1, 1], [], []>} : vector<16x256xbf16>, vector<256x128xbf16>, vector<16x128xf32> -> vector<16x128xf32>
    %c0_4 = arith.constant 0 : index
    %c0_5 = arith.constant 0 : index
    %c0_6 = arith.constant 0 : index
    %11 = vector.load %arg4[%c0_4, %c0_5, %c0_6] : memref<1x16x128xf32, #tpu.memory_space<vmem>>, vector<1x16x128xf32>
    %12 = vector.shape_cast %11 : vector<1x16x128xf32> to vector<16x128xf32>
    %13 = vector.shape_cast %10 : vector<16x128xf32> to vector<1x16x128xf32>
    tpu.vector_store %arg4[%c0_4, %c0_5, %c0_6], %13 {strides = array<i32>} : memref<1x16x128xf32, #tpu.memory_space<vmem>>, vector<1x16x128xf32>,
    return
  }
  func.func @transform_0(%arg0: i32, %arg1: i32) -> (i32, i32, i32) {
    %c0_i32 = arith.constant 0 : i32
    %c0_i32_0 = arith.constant 0 : i32
    return %arg0, %c0_i32, %arg1 : i32, i32, i32
  }
  func.func @transform_1(%arg0: i32, %arg1: i32) -> (i32, i32) {
    %c0_i32 = arith.constant 0 : i32
    %c0_i32_0 = arith.constant 0 : i32
    %c0_i32_1 = arith.constant 0 : i32
    return %c0_i32, %c0_i32_0 : i32, i32
  }
  func.func @transform_2(%arg0: i32, %arg1: i32) -> (i32, i32, i32) {
    %c0_i32 = arith.constant 0 : i32
    %c0_i32_0 = arith.constant 0 : i32
    return %arg0, %c0_i32, %arg1 : i32, i32, i32
  }
}

</mosaic_0001>

<bundles_post_ra>
// kernel: tpu_custom_call.1
= control target key start
LH: loop header
LB: loop body
LE: loop exit
PB: predicated region body
PF: predicated region fallthrough
CT: control target
= control target key end

     0   :  { %s1214_s0 = inlined_call_operand.hbm [shape: s32[2,1,256], index: 0, kind: input, shape index: {}]   ;;  %s1215_s1 = inlined_call_operand.hbm [shape: bf16[16,256], index: 1, kind: input, shape index: {}]   ;;  %s1216_s2 = inlined_call_operand.hbm [shape: f32[2,16,256], index: 2, kind: output, shape index: {}]  }
   0x1   :  { %1222 = sst [smem:[#allocation12_spill]] %s1215_s1 }
   0x2   :  { %7 = vsyncpa [#allocation3], 0 }
   0x3   :  { %9 = vsyncpa [#allocation3 + $0x1], 0 }
   0x4   :  { %10 = vsyncpa [#allocation6], 0 }
   0x5   :  { %11 = vsyncpa [#allocation4], 0 }
   0x6   :  { %13 = vsyncpa [#allocation4 + $0x1], 0  ;;  %s893_s9 = smov 0   ;;  %s895_s10 = smov 0  }
   0x7   :  { %s897_s11 = smov 0   ;;  %s899_s12 = smov 0  }
   0x8   :  { %s901_s13 = smov 0   ;;  %s903_s14 = smov 0  }
   0x9   :  { %s905_s15 = smov 0   ;;  %s907_s16 = smov 0  }
   0xa LB: > { %s505_s17 = sadd.s32 4294967295, %s867_s16   ;;  %s506_s18 = sadd.s32 4294967294, %s867_s16   ;;  %s867_s16 = sphi %s907_s16, %s19_s16   ;;  %s863_s15 = sphi %s905_s15, %s1244_s15   ;;  %s859_s14 = sphi %s903_s14, %s1243_s14   ;;  %s855_s13 = sphi %s901_s13, %s1242_s13   ;;  %s851_s12 = sphi %s899_s12, %s1241_s12   ;;  %s847_s11 = sphi %s897_s11, %s1240_s11   ;;  %s843_s10 = sphi %s895_s10, %s1239_s10   ;;  %s839_s9 = sphi %s893_s9, %s1238_s9  }
   0xb   : > { %p53_p0 = scmp.ne.s32.totalorder %s843_s10, %s839_s9  ;;  %p939_p1 = scmp.eq.s32.totalorder %s505_s17, 0 }
   0xc   : > { %p106_p2 = scmp.eq.s32.totalorder %s506_s18, 3  ;;  %p507_p4 = scmp.ge.s32.totalorder %s867_s16, 1 }
   0xd   : > { %s1223_s19 = scalar_select %p939_p1, 1, 0 }
   0xe   : > { %p945_p3 = por %p939_p1, %p53_p0  ;;  %p950_p5 = por %p106_p2, %p53_p0 }
   0xf   : > { %p113_p6 = scmp.lt.s32.totalorder %s867_s16, 5  ;;  %s869_s23 = smov [#allocation5]  }
  0x10   : > { %s1224_s20 = scalar_select %p945_p3, 1, 0 }
  0x11   : > { %s1225_s21 = scalar_select %p950_p5, 1, 0 }
  0x12   : > { %p955_p7 = pnand %p507_p4, %p113_p6  ;;  %s125_s24 = sshll.u32 %s869_s23, 4  ;;  %s126_s24 = int_to_ptr.vmem [resolvable:$true] %s125_s24 }
  0x13   : > { %s1228_s1 = sld [smem:[#allocation12_spill]] }
  0x14   : > { %s1226_s22 = scalar_select %p955_p7, 1, 0 }
  0x15   : > { %p617_p8 = pneg %p955_p7 }
  0x17   : > { %p963_p9 = pnand %p617_p8, %p939_p1 }
  0x19   : > { %s707_s28 = scalar_lea.hbm %s1228_s1, 256  ;;  %p709_p11 = pneg %p963_p9 }
  0x1a   : > { %p708_p10 = scmp.ne.s32.totalorder %s1228_s1, %s707_s28  ;;  %p714_p0 = scmp.lt.u32.totalorder %s707_s28, %s1228_s1 }
  0x1c   : > { %p710_p12 = pnand %p709_p11, %p708_p10 }
  0x1e   : > { %p711_p13 = pneg %p710_p12 }
  0x20   : > { %p716_p2 = pnand %p714_p0, %p711_p13 }
  0x22   : > { %719 = shalt.err (!%p716_p2)
}
  0x23   : > { %s720_s5 = scalar_lea.vmem %s126_s24, 256  ;;  %p728_p5 = scmp.lt.s32.totalorder %s126_s24, %s126_s24 }
  0x24   : > { %p721_p4 = scmp.ne.s32.totalorder %s126_s24, %s720_s5  ;;  %p729_p1 = scmp.lt.s32.totalorder %s720_s5, %s720_s5 }
  0x26   : > { %p723_p6 = pnand %p721_p4, %p709_p11  ;;  %p730_p3 = por %p729_p1, %p728_p5 }
  0x28   : > { %p724_p8 = pneg %p723_p6 }
  0x2a   : > { %p731_p7 = pnand %p730_p3, %p724_p8 }
  0x2c   : > { %734 = shalt.err (!%p731_p7)
}
  0x2d   : > { %s870_s6 = smov 128   ;;  %s871_s7 = smov 8  }
  0x2e   : > { %620 = dma.hbm_to_vmem [thread:$0]  (!%p963_p9), %s1228_s1, 256, %s126_s24, [#allocation6], %s870_s6, %s870_s6, %s871_s7  }
  0x2f   : > { %s28_s23 = sadd.s32 1, %s859_s14  ;;  %s31_s26 = sadd.s32 1, %s863_s15 }
  0x30   : > { %p29_p1 = scmp.ge.s32.totalorder %s28_s23, 2  ;;  %p100_p3 = scmp.eq.s32.totalorder %s505_s17, 3 }
  0x31   : > { %p47_p5 = scmp.ne.s32.totalorder %s847_s11, %s843_s10  ;;  %s40_s25 = sadd.s32 1, %s847_s11 }
  0x32   : > { %s1246_s23 = smov (%p29_p1, %s28_s23), 0  ;;  %s1248_s26 = smov (!%p29_p1, %s31_s26), %s863_s15 }
  0x33   : > { %1229 = sst [smem:[#allocation11_spill]] %s1246_s23  ;;  %p48_p7 = scmp.eq.s32.totalorder %s867_s16, 0 }
  0x34   : > { %p33_p10 = scmp.ge.s32.totalorder %s1248_s26, 2  ;;  %p994_p11 = por %p100_p3, %p47_p5 }
  0x35   : > { %s36_s27 = ssub.s32 %s859_s14, %s1246_s23  ;;  %p1000_p9 = por %p48_p7, %p47_p5 }
  0x36   : > { %s1250_s26 = smov (%p33_p10, %s1248_s26), 0  ;;  %s139_s17 = sand.u32 1, %s847_s11  }
  0x37   : > { %s510_s29 = sshll.u32 %s863_s15, 1  ;;  %s35_s30 = ssub.s32 %s863_s15, %s1250_s26 }
  0x38   : > { %p630_p12 = scmp.lt.s32.totalorder %s867_s16, 4  ;;  %s37_s3 = sor.u32 %s36_s27, %s35_s30 }
  0x39   : > { %p38_p13 = scmp.eq.s32.totalorder %s37_s3, 0  ;;  %s147_s4 = sadd.s32 %s859_s14, %s510_s29 }
  0x3a   : > { %s511_s5 = sshll.u32 %s147_s4, 4  ;;  %s142_s6 = scalar_lea.vmem [#allocation2], %s139_s17 }
  0x3b   : > { %s151_s7 = sshll.u32 %s142_s6, 4  ;;  %s1018_s23 = scalar_lea.hbm %s1214_s0, %s511_s5  ;;  %s1020_s7 = int_to_ptr.vmem [resolvable:$true] %s151_s7 }
  0x3c   : > { %s1013_s8 = scalar_select %p38_p13, %s847_s11, %s40_s25  }
  0x3d   : > { %p1024_p0 = pnand %p630_p12, %p1000_p9  ;;  %s140_s25 = scalar_lea.sflag [#allocation3], %s139_s17 }
  0x3e   : > { %s735_s29 = scalar_lea.hbm %s1018_s23, 16  ;;  %s740_s3 = scalar_lea.hbm %s1214_s0, 64 }
  0x3f   : > { %p736_p2 = scmp.ne.s32.totalorder %s1018_s23, %s735_s29  ;;  %p737_p4 = pneg %p1024_p0 }
  0x40   : > { %p741_p1 = scmp.lt.u32.totalorder %s1018_s23, %s1214_s0  ;;  %p742_p3 = scmp.lt.u32.totalorder %s740_s3, %s735_s29 }
  0x41   : > { %p738_p6 = pnand %p737_p4, %p736_p2  ;;  %p744_p7 = scmp.lt.u32.totalorder %s735_s29, %s1018_s23 }
  0x42   : > { %p743_p5 = por %p742_p3, %p741_p1 }
  0x43   : > { %p739_p8 = pneg %p738_p6 }
  0x44   : > { %p745_p10 = por %p744_p7, %p743_p5 }
  0x46   : > { %p746_p9 = pnand %p745_p10, %p739_p8 }
  0x48   : > { %749 = shalt.err (!%p746_p9)
}
  0x49   : > { %s750_s17 = scalar_lea.vmem %s1020_s7, 16  ;;  %s872_s5 = smov [#allocation2]  }
  0x4a   : > { %p751_p12 = scmp.ne.s32.totalorder %s1020_s7, %s750_s17  ;;  %s755_s6 = sshll.u32 %s872_s5, 4  ;;  %s756_s6 = int_to_ptr.vmem [resolvable:$false] %s755_s6 }
  0x4b   : > { %s757_s18 = scalar_lea.vmem %s756_s6, 32  ;;  %p758_p6 = scmp.lt.s32.totalorder %s1020_s7, %s756_s6 }
  0x4c   : > { %p753_p13 = pnand %p751_p12, %p737_p4  ;;  %p759_p1 = scmp.lt.s32.totalorder %s757_s18, %s750_s17 }
  0x4e   : > { %p754_p2 = pneg %p753_p13  ;;  %p760_p3 = por %p759_p1, %p758_p6 }
  0x50   : > { %p761_p5 = pnand %p760_p3, %p754_p2 }
  0x52   : > { %764 = shalt.err (!%p761_p5)
}
  0x53   : > { %624 = dma.hbm_to_vmem [thread:$0]  (!%p1024_p0), %s1018_s23, 16, %s1020_s7, %s140_s25  }
  0x54   : > { %p1233_p8 = scmp.ne.s32.totalorder %s1226_s22, 0 }
  0x55   : > { %s1056_s29 = sand.u32 (!%p1233_p8), 1, %s843_s10   ;;  %p1234_p4 = scmp.ne.s32.totalorder (!%p1233_p8), %s1224_s20, 0 }
  0x56   : > { %160 = sbr.rel (%p1233_p8) target bundleno = 371 (0x173), region = 28  ;;  %s163_s1 = scalar_lea.sflag (!%p1233_p8), [#allocation3], %s1056_s29 }
  0x57   : > { %s165_s30 = scalar_lea.vmem (!%p1233_p8), [#allocation2], %s1056_s29 }
  0x5d   : > { %826 = dma.done.wait (%p1234_p4), %s163_s1, 16  }
  0x5e   : > { %828 = vsyncadd (%p1234_p4), %s163_s1, 4294967280  ;;  %p1235_p7 = scmp.ne.s32.totalorder %s1223_s19, 0 }
  0x60   : > { %830 = dma.done.wait (%p1235_p7), [#allocation6], 256  }
  0x61   : > { %832 = vsyncadd (%p1235_p7), [#allocation6], 4294967040  ;;  %v191_v0 = vlaneseq  ;;  %v1079_v11 = vld [vmem:[%s165_s30] ss:$0 sm:$0xff]  ;;  %v706_v14 = vld [vmem:[#allocation5 + $0x4] ss:$8 sps:$4 sm:$0xff]  }
  0x62   : > { %v873_v15 = vmov 1.0|1.0   ;;  %384 = vmatprep.mubr.bf16.mxu0 %v706_v14  ;;  %v704_v36 = vld [vmem:[#allocation5] ss:$8 sps:$4 sm:$0xff]   ;;  %s514_s19 = sshll.u32 %s1056_s29, 4  ;;  %s583_s20 = sshll.u32 %s855_s13, 2 }
  0x63   : > { %v1068_v1 = vshrl.u32 %v191_v0, 7  ;;  %s407_s22 = sadd.s32 %s851_s12, %s583_s20  ;;  %s188_s23 = scalar_lea.vmem [#allocation7], %s514_s19 }
  0x64   : > { %s410_s7 = sshll.u32 %s188_s23, 4  ;;  %s584_s27 = sshll.u32 %s407_s22, 7  ;;  %s1155_s7 = int_to_ptr.vmem [resolvable:$true] %s410_s7 }
  0x65   : > { %v208_v2 = vadd.s32 128, %v1068_v1  ;;  %v209_v3 = vadd.s32 136, %v1068_v1  ;;  %v193_v4 = vadd.s32 8, %v1068_v1  ;;  %v210_v5 = vadd.s32 144, %v1068_v1  ;;  %s1160_s28 = scalar_lea.hbm %s1216_s2, %s584_s27  ;;  %s396_s12 = scalar_lea.sflag [#allocation4], %s1056_s29 }
  0x66   : > { %v211_v6 = vadd.s32 152, %v1068_v1  ;;  %v194_v7 = vadd.s32 16, %v1068_v1  ;;  %v195_v8 = vadd.s32 24, %v1068_v1  ;;  %v212_v9 = vadd.s32 160, %v1068_v1  ;;  %s765_s13 = scalar_lea.vmem %s1155_s7, 256  ;;  %s874_s4 = smov [#allocation7]  }
  0x67   : > { %v213_v10 = vadd.s32 168, %v1068_v1  ;;  %v196_v12 = vadd.s32 32, %v1068_v1  ;;  %v197_v13 = vadd.s32 40, %v1068_v1  ;;  %vm244_vm0 = vcmp.eq.s32.totalorder %v208_v2, %v1079_v11  ;;  %p766_p0 = scmp.ne.s32.totalorder %s1155_s7, %s765_s13  ;;  %s769_s17 = sshll.u32 %s874_s4, 4  ;;  %s770_s17 = int_to_ptr.vmem [resolvable:$false] %s769_s17 }
  0x68   : > { %vm245_vm1 = vcmp.eq.s32.totalorder %v209_v3, %v1079_v11  ;;  %vm228_vm2 = vcmp.eq.s32.totalorder %v1068_v1, %v1079_v11  ;;  %vm229_vm3 = vcmp.eq.s32.totalorder %v193_v4, %v1079_v11  ;;  %vm246_vm5 = vcmp.eq.s32.totalorder %v210_v5, %v1079_v11  ;;  %s771_s5 = scalar_lea.vmem %s770_s17, 512  ;;  %p772_p12 = scmp.lt.s32.totalorder %s1155_s7, %s770_s17 }
  0x69   : > { %vm566_vm4 = vmpackc.low %vm245_vm1, %vm244_vm0  ;;  %vm247_vm6 = vcmp.eq.s32.totalorder %v211_v6, %v1079_v11  ;;  %vm230_vm7 = vcmp.eq.s32.totalorder %v194_v7, %v1079_v11  ;;  %vm231_vm8 = vcmp.eq.s32.totalorder %v195_v8, %v1079_v11  ;;  %vm248_vm10 = vcmp.eq.s32.totalorder %v212_v9, %v1079_v11  ;;  %p767_p10 = pnand %p766_p0, %p994_p11  ;;  %p773_p13 = scmp.lt.s32.totalorder %s771_s5, %s765_s13 }
  0x6a   : > { %587 = vmatprep.subr.msk.bf16.mxu0 %vm566_vm4, %v873_v15  ;;  %vm550_vm9 = vmpackc.low %vm229_vm3, %vm228_vm2  ;;  %vm249_vm11 = vcmp.eq.s32.totalorder %v213_v10, %v1079_v11  ;;  %v214_v16 = vadd.s32 176, %v1068_v1  ;;  %v215_v17 = vadd.s32 184, %v1068_v1  ;;  %vm232_vm15 = vcmp.eq.s32.totalorder %v196_v12, %v1079_v11 }
  0x6b   : > { %588 = vmatpush3.bf16.msk.msra.mxu0 %vm550_vm9, %v873_v15  ;;  %vm568_vm12 = vmpackc.low %vm247_vm6, %vm246_vm5  ;;  %vm233_vm0 = vcmp.eq.s32.totalorder %v197_v13, %v1079_v11  ;;  %v198_v18 = vadd.s32 48, %v1068_v1  ;;  %v199_v19 = vadd.s32 56, %v1068_v1  ;;  %v216_v20 = vadd.s32 192, %v1068_v1  ;;  %p768_p9 = pneg %p767_p10  ;;  %p774_p2 = por %p773_p13, %p772_p12 }
  0x6c   : > { %589 = vmatprep.subr.msk.bf16.mxu0 %vm568_vm12, %v873_v15  ;;  %vm552_vm13 = vmpackc.low %vm231_vm8, %vm230_vm7  ;;  %vm250_vm1 = vcmp.eq.s32.totalorder %v214_v16, %v1079_v11  ;;  %vm251_vm2 = vcmp.eq.s32.totalorder %v215_v17, %v1079_v11  ;;  %v217_v21 = vadd.s32 200, %v1068_v1  ;;  %v200_v22 = vadd.s32 64, %v1068_v1 }
  0x6d   : > { %vm570_vm14 = vmpackc.low %vm249_vm11, %vm248_vm10  ;;  %vm234_vm5 = vcmp.eq.s32.totalorder %v198_v18, %v1079_v11  ;;  %vm235_vm6 = vcmp.eq.s32.totalorder %v199_v19, %v1079_v11  ;;  %v201_v23 = vadd.s32 72, %v1068_v1  ;;  %vm252_vm7 = vcmp.eq.s32.totalorder %v216_v20, %v1079_v11  ;;  %p775_p6 = pnand %p774_p2, %p768_p9 }
  0x6e   : > { %vm554_vm3 = vmpackc.low %vm233_vm0, %vm232_vm15  ;;  %vm253_vm8 = vcmp.eq.s32.totalorder %v217_v21, %v1079_v11  ;;  %v218_v24 = vadd.s32 208, %v1068_v1  ;;  %v219_v25 = vadd.s32 216, %v1068_v1  ;;  %vm236_vm11 = vcmp.eq.s32.totalorder %v200_v22, %v1079_v11 }
  0x6f   : > { %590 = vmatpush3.bf16.msk.msra.mxu0 %vm552_vm13, %v873_v15  ;;  %vm572_vm4 = vmpackc.low %vm251_vm2, %vm250_vm1  ;;  %vm237_vm12 = vcmp.eq.s32.totalorder %v201_v23, %v1079_v11  ;;  %v202_v26 = vadd.s32 80, %v1068_v1  ;;  %v203_v27 = vadd.s32 88, %v1068_v1  ;;  %v220_v28 = vadd.s32 224, %v1068_v1 }
  0x70   : > { %591 = vmatprep.subr.msk.bf16.mxu0 %vm570_vm14, %v873_v15  ;;  %vm556_vm9 = vmpackc.low %vm235_vm6, %vm234_vm5  ;;  %vm254_vm13 = vcmp.eq.s32.totalorder %v218_v24, %v1079_v11  ;;  %vm255_vm14 = vcmp.eq.s32.totalorder %v219_v25, %v1079_v11  ;;  %v221_v29 = vadd.s32 232, %v1068_v1  ;;  %v204_v30 = vadd.s32 96, %v1068_v1 }
  0x71   : > { %vm574_vm10 = vmpackc.low %vm253_vm8, %vm252_vm7  ;;  %vm238_vm1 = vcmp.eq.s32.totalorder %v202_v26, %v1079_v11  ;;  %vm239_vm2 = vcmp.eq.s32.totalorder %v203_v27, %v1079_v11  ;;  %v205_v31 = vadd.s32 104, %v1068_v1  ;;  %v222_v32 = vadd.s32 240, %v1068_v1 }
  0x72   : > { %vm558_vm15 = vmpackc.low %vm237_vm12, %vm236_vm11  ;;  %v223_v33 = vadd.s32 248, %v1068_v1  ;;  %vm240_vm7 = vcmp.eq.s32.totalorder %v204_v30, %v1079_v11  ;;  %v206_v34 = vadd.s32 112, %v1068_v1  ;;  %v207_v35 = vadd.s32 120, %v1068_v1 }
  0x73   : > { %592 = vmatpush3.bf16.msk.msra.mxu0 %vm554_vm3, %v873_v15  ;;  %vm576_vm0 = vmpackc.low %vm255_vm14, %vm254_vm13  ;;  %vm256_vm3 = vcmp.eq.s32.totalorder %v220_v28, %v1079_v11  ;;  %vm241_vm8 = vcmp.eq.s32.totalorder %v205_v31, %v1079_v11 }
  0x74   : > { %593 = vmatprep.subr.msk.bf16.mxu0 %vm572_vm4, %v873_v15  ;;  %vm257_vm4 = vcmp.eq.s32.totalorder %v221_v29, %v1079_v11  ;;  %vm560_vm5 = vmpackc.low %vm239_vm2, %vm238_vm1  ;;  %vm242_vm13 = vcmp.eq.s32.totalorder %v206_v34, %v1079_v11  ;;  %vm243_vm14 = vcmp.eq.s32.totalorder %v207_v35, %v1079_v11 }
  0x75   : > { %vm578_vm6 = vmpackc.low %vm257_vm4, %vm256_vm3 }
  0x76   : > { %vm562_vm11 = vmpackc.low %vm241_vm8, %vm240_vm7 }
  0x77   : > { %594 = vmatpush3.bf16.msk.msra.mxu0 %vm556_vm9, %v873_v15  ;;  %vm258_vm9 = vcmp.eq.s32.totalorder %v222_v32, %v1079_v11 }
  0x78   : > { %595 = vmatprep.subr.msk.bf16.mxu0 %vm574_vm10, %v873_v15  ;;  %vm259_vm10 = vcmp.eq.s32.totalorder %v223_v33, %v1079_v11 }
  0x79   : > { %vm580_vm12 = vmpackc.low %vm259_vm10, %vm258_vm9 }
  0x7b   : > { %596 = vmatpush3.bf16.msk.msra.mxu0 %vm558_vm15, %v873_v15  ;;  %vm564_vm15 = vmpackc.low %vm243_vm14, %vm242_vm13 }
  0x7c   : > { %597 = vmatprep.subr.msk.bf16.mxu0 %vm576_vm0, %v873_v15 }
  0x7f   : > { %598 = vmatpush3.bf16.msk.msra.mxu0 %vm560_vm5, %v873_v15 }
  0x80   : > { %599 = vmatprep.subr.msk.bf16.mxu0 %vm578_vm6, %v873_v15 }
  0x83   : > { %600 = vmatpush3.bf16.msk.msra.mxu0 %vm562_vm11, %v873_v15 }
  0x84   : > { %601 = vmatprep.subr.msk.bf16.mxu0 %vm580_vm12, %v873_v15 }
  0x87   : > { %602 = vmatpush3.bf16.msk.msra.mxu0 %vm564_vm15, %v873_v15 }
  0x8a   : > { %385 = vmatmul.mubr.bf16.vlgmr.msra.gmra.mrb[0].mxu0 %v704_v36 }
 0x15d   : > { %v603_v37 = vpop.f32.mrb[0].mxu0 }
 0x15e   : > { %v604_v38 = vpop.f32.mrb[1].mxu0 }
 0x15f   : > { %v605_v39 = vadd.f32 %v604_v38, %v603_v37  ;;  %v606_v40 = vpop.f32.mrb[2].mxu0 }
 0x160   : > { %v607_v41 = vpop.f32.mrb[3].mxu0 }
 0x161   : > { %393 = vst [vmem:[%s188_s23] sm:$0xff] %v605_v39  ;;  %v608_v42 = vadd.f32 %v607_v41, %v606_v40 }
 0x163   : > { %394 = vst [vmem:[%s188_s23 + $0x8] sm:$0xff] %v608_v42 }
 0x164   : > { %778 = shalt.err (!%p775_p6)
}
 0x165   : > { %s779_s6 = scalar_lea.hbm %s1160_s28, 256  ;;  %s783_s30 = scalar_lea.hbm %s1216_s2, 1024 }
 0x166   : > { %p780_p1 = scmp.ne.s32.totalorder %s1160_s28, %s779_s6  ;;  %p784_p8 = scmp.lt.u32.totalorder %s1160_s28, %s1216_s2 }
 0x167   : > { %p785_p4 = scmp.lt.u32.totalorder %s783_s30, %s779_s6  ;;  %p787_p0 = scmp.lt.u32.totalorder %s779_s6, %s1160_s28 }
 0x168   : > { %p781_p3 = pnand %p780_p1, %p994_p11 }
 0x169   : > { %p786_p7 = por %p785_p4, %p784_p8 }
 0x16a   : > { %p782_p5 = pneg %p781_p3 }
 0x16b   : > { %p788_p10 = por %p787_p0, %p786_p7 }
 0x16d   : > { %p789_p9 = pnand %p788_p10, %p782_p5 }
 0x16f   : > { %792 = shalt.err (!%p789_p9)
}
 0x170   : > { %s875_s22 = smov 128   ;;  %s876_s23 = smov 256  }
 0x171   : > { %s877_s27 = smov 8  }
 0x172   : > { %615 = dma.vmem_to_hbm [thread:$0]  (%p994_p11), %s1155_s7, 256, %s1160_s28, %s396_s12, %s875_s22, %s876_s23, %s877_s27  }
 0x173 PF: > { %p632_p12 = scmp.ge.s32.totalorder %s867_s16, 2  ;;  %s425_s25 = sand.u32 1, %s839_s9  }
 0x174   : > { %p1236_p13 = scmp.ne.s32.totalorder %s1225_s21, 0  ;;  %s426_s3 = scalar_lea.sflag [#allocation4], %s425_s25 }
 0x176   : > { %p626_p2 = pnand %p632_p12, %p1236_p13 }
 0x178   : > { %834 = dma.done.wait (!%p626_p2), %s426_s3, 256  }
 0x179   : > { %836 = vsyncadd (!%p626_p2), %s426_s3, 4294967040  ;;  %s19_s16 = sadd.s32 1, %s867_s16   ;;  %s1237_s24 = sld [smem:[#allocation11_spill]] }
 0x17a   : > { %p16_p6 = scmp.ge.s32.totalorder %s19_s16, 6   ;;  %s1238_s9 = smov %s843_s10 }
 0x17b   : > { %s1239_s10 = smov %s847_s11  ;;  %s1240_s11 = smov %s1013_s8 }
 0x17c   : > { %s1241_s12 = smov %s859_s14  ;;  %s1242_s13 = smov %s863_s15 }
 0x17d   : > { %s1244_s15 = smov %s1250_s26  ;;  %18 = sbr.rel (!%p16_p6) target bundleno = 10 (0xa), region = 77 }
 0x17f   : > { %s1243_s14 = smov %s1237_s24 }
 0x184   :  { %431 = vsyncpa [#allocation3], 1 }
 0x185   :  { %433 = vsyncpa [#allocation3 + $0x1], 1 }
 0x186   :  { %434 = vsyncpa [#allocation6], 1 }
 0x187   :  { %435 = vsyncpa [#allocation4], 1 }
 0x188   :  { %437 = vsyncpa [#allocation4 + $0x1], 1 }

</bundles_post_ra>
